<compile_context>
chip_gen: v7x
topology: tpu7x:2x2x1
jax: 0.10.0
libtpu: 0.0.40
codegen_flags: <defaults>
</compile_context>

<pallas_src>
import functools
import math

import jax
import jax.numpy as jnp
from jax.experimental import pallas as pl
from jax.experimental.pallas import tpu as pltpu


def _cdiv(a, b):
    return (a + b - 1) // b


def _round_up(a, b):
    return _cdiv(a, b) * b


def _tpu_info():
    """(vmem_capacity_bytes, num_tensorcores) with conservative fallbacks."""
    vmem_cap = 64 * 1024 * 1024  # v7x per-core value; conservative for older chips
    n_cores = 1
    try:
        info = pltpu.get_tpu_info()
        vmem_cap = int(getattr(info, "vmem_capacity_bytes", vmem_cap)) or vmem_cap
        for attr in ("num_cores", "core_count", "num_tensorcores",
                     "tensorcore_count", "cores_per_chip", "num_cores_per_chip"):
            v = getattr(info, attr, None)
            if isinstance(v, int) and v > 0:
                n_cores = v
                break
        if n_cores == 1:
            ver = getattr(info, "chip_version", None)
            name = str(getattr(ver, "name", ver)).lower() if ver is not None else ""
            if "7" in name:  # v7x family: 2 TensorCores per chip
                n_cores = 2
    except Exception:
        pass
    return vmem_cap, n_cores


def _audio_loss_kernel(*refs, use_matmul, fold_center, has_dead, tail_partial,
                       rows_valid, row_tile, max_block):
    if use_matmul:
        cmat_ref, dyn_ref, gt_ref, out_ref, acc_ref = refs
    else:
        dyn_ref, gt_ref, out_ref, acc_ref = refs

    split = pl.program_id(0)
    step = pl.program_id(1)
    n_steps = pl.num_programs(1)
    block_idx = split * n_steps + step  # global (unclamped) block index

    @pl.when(step == 0)
    def _init():
        acc_ref[...] = jnp.zeros_like(acc_ref)

    def accumulate(masked):
        gt = gt_ref[...].astype(jnp.float32)
        dyn = dyn_ref[...].astype(jnp.float32)
        if use_matmul:
            if fold_center:
                # Centering folded into one block-diagonal matmul on the idle MXU.
                centered = jnp.dot(gt, cmat_ref[...],
                                   preferred_element_type=jnp.float32,
                                   precision=jax.lax.Precision.HIGHEST)
            else:
                # Proven-safe variant: segmented mean via matmul, subtract on VPU.
                mean_b = jnp.dot(gt, cmat_ref[...],
                                 preferred_element_type=jnp.float32)
                centered = gt - mean_b
        else:
            # feat too large for the MXU trick: plain lane-axis mean.
            centered = gt - jnp.mean(gt, axis=-1, keepdims=True)
        diff = dyn - centered
        sq = diff * diff
        if masked:
            # Select (not multiply) so garbage in padded tail rows can't propagate.
            base = block_idx * row_tile
            row_ids = base + jax.lax.broadcasted_iota(jnp.int32, sq.shape, 0)
            sq = jnp.where(row_ids < rows_valid, sq, 0.0)
        # Pure-VPU fold onto the small accumulator; the single cross-lane reduce
        # happens once in the finalize branch.
        acc_ref[...] += jnp.sum(sq.reshape((-1,) + acc_ref.shape), axis=0)

    if has_dead or tail_partial:
        interior_last = max_block - 1 if tail_partial else max_block

        @pl.when(block_idx <= interior_last)
        def _interior():
            accumulate(masked=False)

        if tail_partial:
            @pl.when(block_idx == max_block)
            def _tail():
                accumulate(masked=True)
        # block_idx > max_block: clamped dead step -> no compute at all.
    else:
        accumulate(masked=False)

    @pl.when(step == n_steps - 1)
    def _finalize():
        out_ref[0, 0] = jnp.sum(acc_ref[...])


def audio_loss(dynamics: jax.Array, gt_poses: jax.Array) -> jax.Array:
    assert dynamics.shape == gt_poses.shape, "dynamics and gt_poses must have same shape"
    feat = dynamics.shape[-1]
    rows = math.prod(dynamics.shape[:-1]) if dynamics.ndim > 1 else 1
    total_elems = rows * feat  # divisor always uses the ORIGINAL element count

    dyn2d = dynamics.reshape(rows, feat)
    gt2d = gt_poses.reshape(rows, feat)

    vmem_cap, n_cores = _tpu_info()

    # ---- Lane packing: pack `pack` pose vectors per 128-wide lane row when feat < 128.
    pack = max(1, 128 // feat) if feat < 128 else 1
    if pack > 1 and rows % pack != 0:
        pad_rows = pack - rows % pack
        dyn2d = jnp.pad(dyn2d, ((0, pad_rows), (0, 0)))
        gt2d = jnp.pad(gt2d, ((0, pad_rows), (0, 0)))
        rows += pad_rows
    feat_p = feat * pack
    rows_p = rows // pack
    dyn2d = dyn2d.reshape(rows_p, feat_p)
    gt2d = gt2d.reshape(rows_p, feat_p)

    # MXU centering for feat_p <= 256 (beyond that the feat^2 flops start competing
    # with the memory roofline on v5e).
    use_matmul = feat_p <= 256

    def make_center_mat(fold):
        seg = jnp.arange(feat_p, dtype=jnp.int32) // feat
        avg = (seg[:, None] == seg[None, :]).astype(jnp.float32) / jnp.float32(feat)
        return (jnp.eye(feat_p, dtype=jnp.float32) - avg) if fold else avg

    in_itemsize = max(dyn2d.dtype.itemsize, gt2d.dtype.itemsize)
    sub = 8 if in_itemsize >= 4 else 32 // in_itemsize  # sublane granule (16 for bf16)

    def run(splits_req, core_parallel, n_buf, fold_center):
        # ---- VMEM-budgeted row tile: n_buf-deep input pipeline + f32 intermediates.
        if rows_p <= sub:
            row_tile = rows_p  # block == full first dim (always legal)
        else:
            vmem_budget = max(8 << 20, int(vmem_cap * 0.45))
            bytes_per_row = feat_p * (2 * n_buf * in_itemsize + 3 * 4)
            row_tile = max(sub, min(vmem_budget // bytes_per_row, 32768))
            # Keep every core busy: no bigger than one split's share.
            row_tile = min(row_tile, _round_up(_cdiv(rows_p, max(1, splits_req)), sub))
            row_tile = max(sub, row_tile // sub * sub)
            if row_tile >= rows_p:
                row_tile = rows_p

        n_blocks = _cdiv(rows_p, row_tile)
        num_splits = max(1, min(splits_req, n_blocks))
        steps = _cdiv(n_blocks, num_splits)
        has_dead = num_splits * steps > n_blocks      # clamped dead steps exist
        tail_partial = (rows_p % row_tile) != 0        # last real block is partial
        max_block = n_blocks - 1

        if has_dead:
            def in_idx(s, i):
                return (jnp.minimum(s * steps + i, max_block), 0)
        else:
            def in_idx(s, i):
                return (s * steps + i, 0)

        def stream_spec():
            if n_buf != 2:
                return pl.BlockSpec((row_tile, feat_p), in_idx,
                                    pipeline_mode=pl.Buffered(n_buf))
            return pl.BlockSpec((row_tile, feat_p), in_idx)

        in_specs = [stream_spec(), stream_spec()]
        args = [dyn2d, gt2d]
        if use_matmul:
            in_specs.insert(0, pl.BlockSpec((feat_p, feat_p), lambda s, i: (0, 0)))
            args.insert(0, make_center_mat(fold_center))

        acc_rows = 8 if row_tile % 8 == 0 else row_tile

        kernel = functools.partial(
            _audio_loss_kernel,
            use_matmul=use_matmul, fold_center=fold_center, has_dead=has_dead,
            tail_partial=tail_partial, rows_valid=rows_p, row_tile=row_tile,
            max_block=max_block)

        # VMEM: n_buf-deep pipeline on both streaming inputs + materialized f32
        # intermediates (matmul out / diff / sq) + accumulator + centering matrix + slack.
        block_in = row_tile * feat_p * in_itemsize
        f32_tile = row_tile * feat_p * 4
        vmem_need = (2 * n_buf * block_in + 3 * f32_tile
                     + acc_rows * feat_p * 4
                     + (2 * feat_p * feat_p * 4 if use_matmul else 0)
                     + (2 << 20))
        vmem_limit = int(min(vmem_cap, max(vmem_need, 16 << 20)))

        if core_parallel and num_splits > 1:
            dims = (pltpu.CORE_PARALLEL, pltpu.ARBITRARY)
        else:
            dims = ("arbitrary", "arbitrary")

        return pl.pallas_call(
            kernel,
            out_shape=jax.ShapeDtypeStruct((num_splits, 1), jnp.float32),
            grid_spec=pltpu.PrefetchScalarGridSpec(
                num_scalar_prefetch=0,
                grid=(num_splits, steps),
                in_specs=in_specs,
                out_specs=pl.BlockSpec((1, 1), lambda s, i: (s, 0),
                                       memory_space=pltpu.SMEM),
                scratch_shapes=[pltpu.VMEM((acc_rows, feat_p), jnp.float32)],
            ),
            compiler_params=pltpu.CompilerParams(
                dimension_semantics=dims,
                vmem_limit_bytes=vmem_limit,
            ),
        )(*args)

    # Eager-only retry ladder: most aggressive config first, proven-safe config last.
    attempts = []
    if n_cores > 1:
        attempts.append(dict(splits_req=n_cores, core_parallel=True, n_buf=3,
                             fold_center=True))
    attempts.append(dict(splits_req=1, core_parallel=False, n_buf=2, fold_center=True))
    attempts.append(dict(splits_req=1, core_parallel=False, n_buf=2, fold_center=False))

    partials = None
    last_err = None
    for cfg in attempts:
        try:
            partials = run(**cfg)
            break
        except Exception as e:  # e.g. CORE_PARALLEL / Buffered / precision unsupported
            last_err = e
    if partials is None:
        raise last_err

    return jnp.sum(partials) / jnp.float32(total_elems)


def audio_loss_ref(dynamics, gt_poses):
    mean = jnp.mean(gt_poses, axis=-1, keepdims=True)
    gt = gt_poses - mean
    return jnp.mean((dynamics - gt) ** 2)


if __name__ == "__main__":
    key = jax.random.PRNGKey(0)

    # (batch, seq, pose_dim) shapes consistent with the module's forward.
    test_shapes = [
        (2, 8, 32),    # lane-packed (pack=4), single tile
        (4, 50, 32),   # lane-packed, partial tail tile on multi-core configs
        (3, 7, 32),    # lane-packed, rows % pack != 0 -> zero-row padding path
        (2, 16, 128),  # full-lane path (pack=1), matmul centering with I - J/feat
    ]

    for idx, shape in enumerate(test_shapes):
        k1, k2 = jax.random.split(jax.random.fold_in(key, idx))
        dynamics = jax.random.normal(k1, shape, dtype=jnp.float32)
        gt_poses = jax.random.normal(k2, shape, dtype=jnp.float32)

        loss = jax.block_until_ready(audio_loss(dynamics, gt_poses))
        ref = audio_loss_ref(dynamics, gt_poses)
        assert jnp.allclose(loss, ref, rtol=1e-5, atol=1e-5), (shape, loss, ref)

    print("KERNEL_OK")
</pallas_src>

<mosaic_0001>
module attributes {stable_mosaic.version = 11 : i64} {
  func.func @_audio_loss_kernel(%arg0: i32, %arg1: i32, %arg2: memref<128x128xf32, #tpu.memory_space<vmem>>, %arg3: memref<4x128xf32, #tpu.memory_space<vmem>>, %arg4: memref<4x128xf32, #tpu.memory_space<vmem>>, %arg5: memref<1x1xf32, #tpu.memory_space<smem>>, %arg6: memref<4x128xf32, #tpu.memory_space<vmem>>) attributes {dimension_semantics = [#tpu.dimension_semantics<arbitrary>, #tpu.dimension_semantics<arbitrary>], iteration_bounds = array<i64: 1, 1>, scalar_prefetch = 0 : i64, scratch_operands = 1 : i64, tpu.core_type = #tpu.core_type<tc>, window_params = [{pipeline_mode = #tpu.pipeline_mode<synchronous>, transform_indices = @transform_0, window_bounds = array<i64: 128, 128>}, {transform_indices = @transform_1, window_bounds = array<i64: 4, 128>}, {transform_indices = @transform_2, window_bounds = array<i64: 4, 128>}, {transform_indices = @transform_3, window_bounds = array<i64: 1, 1>}]} {
    %c0_i32 = arith.constant 0 : i32
    %0 = arith.cmpi eq, %arg1, %c0_i32 : i32
    %1 = arith.extui %0 : i1 to i32
    %c0_i32_0 = arith.constant 0 : i32
    %2 = arith.cmpi ne, %1, %c0_i32_0 : i32
    scf.if %2 {
      %cst_13 = arith.constant 0.000000e+00 : f32
      %17 = vector.broadcast %cst_13 : f32 to vector<4x128xf32>
      %c0_14 = arith.constant 0 : index
      %c0_15 = arith.constant 0 : index
      %18 = vector.load %arg6[%c0_14, %c0_15] : memref<4x128xf32, #tpu.memory_space<vmem>>, vector<4x128xf32>
      tpu.vector_store %arg6[%c0_14, %c0_15], %17 {strides = array<i32>} : memref<4x128xf32, #tpu.memory_space<vmem>>, vector<4x128xf32>,
    } else {
    }
    %c0 = arith.constant 0 : index
    %c0_1 = arith.constant 0 : index
    %3 = vector.load %arg4[%c0, %c0_1] : memref<4x128xf32, #tpu.memory_space<vmem>>, vector<4x128xf32>
    %c0_2 = arith.constant 0 : index
    %c0_3 = arith.constant 0 : index
    %4 = vector.load %arg3[%c0_2, %c0_3] : memref<4x128xf32, #tpu.memory_space<vmem>>, vector<4x128xf32>
    %c0_4 = arith.constant 0 : index
    %c0_5 = arith.constant 0 : index
    %5 = vector.load %arg2[%c0_4, %c0_5] : memref<128x128xf32, #tpu.memory_space<vmem>>, vector<128x128xf32>
    %cst = arith.constant dense<0.000000e+00> : vector<4x128xf32>
    %6 = tpu.matmul %3, %5, %cst {dimension_numbers = #tpu.dot_dimension_numbers<[1], [0], [0], [1], [0, 0, 1, 1], [], []>, precision = #tpu.contract_precision<fp32>} : vector<4x128xf32>, vector<128x128xf32>, vector<4x128xf32> -> vector<4x128xf32>
    %7 = arith.subf %4, %6 : vector<4x128xf32>
    %8 = arith.mulf %7, %7 : vector<4x128xf32>
    %c0_6 = arith.constant 0 : index
    %c0_7 = arith.constant 0 : index
    %9 = vector.load %arg6[%c0_6, %c0_7] : memref<4x128xf32, #tpu.memory_space<vmem>>, vector<4x128xf32>
    %10 = vector.shape_cast %8 : vector<4x128xf32> to vector<1x4x128xf32>
    %cst_8 = arith.constant dense<0.000000e+00> : vector<4x128xf32>
    %11 = vector.multi_reduction <add>, %10, %cst_8 [0] : vector<1x4x128xf32> to vector<4x128xf32>
    %12 = arith.addf %9, %11 : vector<4x128xf32>
    %c0_9 = arith.constant 0 : index
    %c0_10 = arith.constant 0 : index
    %13 = vector.load %arg6[%c0_9, %c0_10] : memref<4x128xf32, #tpu.memory_space<vmem>>, vector<4x128xf32>
    tpu.vector_store %arg6[%c0_9, %c0_10], %12 {strides = array<i32>} : memref<4x128xf32, #tpu.memory_space<vmem>>, vector<4x128xf32>,
    %c0_i32_11 = arith.constant 0 : i32
    %14 = arith.cmpi eq, %arg1, %c0_i32_11 : i32
    %15 = arith.extui %14 : i1 to i32
    %c0_i32_12 = arith.constant 0 : i32
    %16 = arith.cmpi ne, %15, %c0_i32_12 : i32
    scf.if %16 {
      %c0_13 = arith.constant 0 : index
      %c0_14 = arith.constant 0 : index
      %17 = vector.load %arg6[%c0_13, %c0_14] : memref<4x128xf32, #tpu.memory_space<vmem>>, vector<4x128xf32>
      %18 = vector.shape_cast %17 : vector<4x128xf32> to vector<1x4x128xf32>
      %cst_15 = arith.constant dense<0.000000e+00> : vector<1xf32>
      %19 = vector.multi_reduction <add>, %18, %cst_15 [1, 2] : vector<1x4x128xf32> to vector<1xf32>
      %20 = vector.shape_cast %19 : vector<1xf32> to vector<1x1x1xf32>
      %21 = vector.extract %20[0, 0, 0] : f32 from vector<1x1x1xf32>
      %c0_16 = arith.constant 0 : index
      %c0_17 = arith.constant 0 : index
      %22 = memref.load %arg5[%c0_16, %c0_17] : memref<1x1xf32, #tpu.memory_space<smem>>
      memref.store %21, %arg5[%c0_16, %c0_17] : memref<1x1xf32, #tpu.memory_space<smem>>
    } else {
    }
    return
  }
  func.func @transform_0(%arg0: i32, %arg1: i32) -> (i32, i32) {
    %c0_i32 = arith.constant 0 : i32
    %c0_i32_0 = arith.constant 0 : i32
    %c0_i32_1 = arith.constant 0 : i32
    return %c0_i32, %c0_i32_0 : i32, i32
  }
  func.func @transform_1(%arg0: i32, %arg1: i32) -> (i32, i32) {
    %c1_i32 = arith.constant 1 : i32
    %0 = arith.muli %arg0, %c1_i32 : i32
    %1 = arith.addi %0, %arg1 : i32
    %c0_i32 = arith.constant 0 : i32
    %c0_i32_0 = arith.constant 0 : i32
    return %1, %c0_i32 : i32, i32
  }
  func.func @transform_2(%arg0: i32, %arg1: i32) -> (i32, i32) {
    %c1_i32 = arith.constant 1 : i32
    %0 = arith.muli %arg0, %c1_i32 : i32
    %1 = arith.addi %0, %arg1 : i32
    %c0_i32 = arith.constant 0 : i32
    %c0_i32_0 = arith.constant 0 : i32
    return %1, %c0_i32 : i32, i32
  }
  func.func @transform_3(%arg0: i32, %arg1: i32) -> (i32, i32) {
    %c0_i32 = arith.constant 0 : i32
    %c0_i32_0 = arith.constant 0 : i32
    return %arg0, %c0_i32 : i32, i32
  }
}

module attributes {stable_mosaic.version = 11 : i64} {
  func.func @_audio_loss_kernel(%arg0: i32, %arg1: i32, %arg2: memref<128x128xf32, #tpu.memory_space<vmem>>, %arg3: memref<4x128xf32, #tpu.memory_space<vmem>>, %arg4: memref<4x128xf32, #tpu.memory_space<vmem>>, %arg5: memref<1x1xf32, #tpu.memory_space<smem>>, %arg6: memref<4x128xf32, #tpu.memory_space<vmem>>) attributes {dimension_semantics = [#tpu.dimension_semantics<arbitrary>, #tpu.dimension_semantics<arbitrary>], iteration_bounds = array<i64: 1, 1>, scalar_prefetch = 0 : i64, scratch_operands = 1 : i64, tpu.core_type = #tpu.core_type<tc>, window_params = [{pipeline_mode = #tpu.pipeline_mode<synchronous>, transform_indices = @transform_0, window_bounds = array<i64: 128, 128>}, {transform_indices = @transform_1, window_bounds = array<i64: 4, 128>}, {transform_indices = @transform_2, window_bounds = array<i64: 4, 128>}, {transform_indices = @transform_3, window_bounds = array<i64: 1, 1>}]} {
    %c0_i32 = arith.constant 0 : i32
    %0 = arith.cmpi eq, %arg1, %c0_i32 : i32
    %1 = arith.extui %0 : i1 to i32
    %c0_i32_0 = arith.constant 0 : i32
    %2 = arith.cmpi ne, %1, %c0_i32_0 : i32
    scf.if %2 {
      %cst_13 = arith.constant 0.000000e+00 : f32
      %18 = vector.broadcast %cst_13 : f32 to vector<4x128xf32>
      %c0_14 = arith.constant 0 : index
      %c0_15 = arith.constant 0 : index
      %19 = vector.load %arg6[%c0_14, %c0_15] : memref<4x128xf32, #tpu.memory_space<vmem>>, vector<4x128xf32>
      tpu.vector_store %arg6[%c0_14, %c0_15], %18 {strides = array<i32>} : memref<4x128xf32, #tpu.memory_space<vmem>>, vector<4x128xf32>,
    } else {
    }
    %c0 = arith.constant 0 : index
    %c0_1 = arith.constant 0 : index
    %3 = vector.load %arg4[%c0, %c0_1] : memref<4x128xf32, #tpu.memory_space<vmem>>, vector<4x128xf32>
    %c0_2 = arith.constant 0 : index
    %c0_3 = arith.constant 0 : index
    %4 = vector.load %arg3[%c0_2, %c0_3] : memref<4x128xf32, #tpu.memory_space<vmem>>, vector<4x128xf32>
    %c0_4 = arith.constant 0 : index
    %c0_5 = arith.constant 0 : index
    %5 = vector.load %arg2[%c0_4, %c0_5] : memref<128x128xf32, #tpu.memory_space<vmem>>, vector<128x128xf32>
    %cst = arith.constant dense<0.000000e+00> : vector<4x128xf32>
    %6 = tpu.matmul %3, %5, %cst {dimension_numbers = #tpu.dot_dimension_numbers<[1], [0], [0], [1], [0, 0, 1, 1], [], []>} : vector<4x128xf32>, vector<128x128xf32>, vector<4x128xf32> -> vector<4x128xf32>
    %7 = arith.subf %3, %6 : vector<4x128xf32>
    %8 = arith.subf %4, %7 : vector<4x128xf32>
    %9 = arith.mulf %8, %8 : vector<4x128xf32>
    %c0_6 = arith.constant 0 : index
    %c0_7 = arith.constant 0 : index
    %10 = vector.load %arg6[%c0_6, %c0_7] : memref<4x128xf32, #tpu.memory_space<vmem>>, vector<4x128xf32>
    %11 = vector.shape_cast %9 : vector<4x128xf32> to vector<1x4x128xf32>
    %cst_8 = arith.constant dense<0.000000e+00> : vector<4x128xf32>
    %12 = vector.multi_reduction <add>, %11, %cst_8 [0] : vector<1x4x128xf32> to vector<4x128xf32>
    %13 = arith.addf %10, %12 : vector<4x128xf32>
    %c0_9 = arith.constant 0 : index
    %c0_10 = arith.constant 0 : index
    %14 = vector.load %arg6[%c0_9, %c0_10] : memref<4x128xf32, #tpu.memory_space<vmem>>, vector<4x128xf32>
    tpu.vector_store %arg6[%c0_9, %c0_10], %13 {strides = array<i32>} : memref<4x128xf32, #tpu.memory_space<vmem>>, vector<4x128xf32>,
    %c0_i32_11 = arith.constant 0 : i32
    %15 = arith.cmpi eq, %arg1, %c0_i32_11 : i32
    %16 = arith.extui %15 : i1 to i32
    %c0_i32_12 = arith.constant 0 : i32
    %17 = arith.cmpi ne, %16, %c0_i32_12 : i32
    scf.if %17 {
      %c0_13 = arith.constant 0 : index
      %c0_14 = arith.constant 0 : index
      %18 = vector.load %arg6[%c0_13, %c0_14] : memref<4x128xf32, #tpu.memory_space<vmem>>, vector<4x128xf32>
      %19 = vector.shape_cast %18 : vector<4x128xf32> to vector<1x4x128xf32>
      %cst_15 = arith.constant dense<0.000000e+00> : vector<1xf32>
      %20 = vector.multi_reduction <add>, %19, %cst_15 [1, 2] : vector<1x4x128xf32> to vector<1xf32>
      %21 = vector.shape_cast %20 : vector<1xf32> to vector<1x1x1xf32>
      %22 = vector.extract %21[0, 0, 0] : f32 from vector<1x1x1xf32>
      %c0_16 = arith.constant 0 : index
      %c0_17 = arith.constant 0 : index
      %23 = memref.load %arg5[%c0_16, %c0_17] : memref<1x1xf32, #tpu.memory_space<smem>>
      memref.store %22, %arg5[%c0_16, %c0_17] : memref<1x1xf32, #tpu.memory_space<smem>>
    } else {
    }
    return
  }
  func.func @transform_0(%arg0: i32, %arg1: i32) -> (i32, i32) {
    %c0_i32 = arith.constant 0 : i32
    %c0_i32_0 = arith.constant 0 : i32
    %c0_i32_1 = arith.constant 0 : i32
    return %c0_i32, %c0_i32_0 : i32, i32
  }
  func.func @transform_1(%arg0: i32, %arg1: i32) -> (i32, i32) {
    %c1_i32 = arith.constant 1 : i32
    %0 = arith.muli %arg0, %c1_i32 : i32
    %1 = arith.addi %0, %arg1 : i32
    %c0_i32 = arith.constant 0 : i32
    %c0_i32_0 = arith.constant 0 : i32
    return %1, %c0_i32 : i32, i32
  }
  func.func @transform_2(%arg0: i32, %arg1: i32) -> (i32, i32) {
    %c1_i32 = arith.constant 1 : i32
    %0 = arith.muli %arg0, %c1_i32 : i32
    %1 = arith.addi %0, %arg1 : i32
    %c0_i32 = arith.constant 0 : i32
    %c0_i32_0 = arith.constant 0 : i32
    return %1, %c0_i32 : i32, i32
  }
  func.func @transform_3(%arg0: i32, %arg1: i32) -> (i32, i32) {
    %c0_i32 = arith.constant 0 : i32
    %c0_i32_0 = arith.constant 0 : i32
    return %arg0, %c0_i32 : i32, i32
  }
}

</mosaic_0001>

<bundles_post_ra>
// kernel: tpu_custom_call.1
= control target key start
LH: loop header
LB: loop body
LE: loop exit
PB: predicated region body
PF: predicated region fallthrough
CT: control target
= control target key end

     0   :  { %8 = vsyncpa [#allocation4], 0  ;;  %s1620_s0 = inlined_call_operand.hbm [shape: f32[128,128], index: 0, kind: input, shape index: {}]   ;;  %s1621_s1 = inlined_call_operand.hbm [shape: f32[4,128], index: 1, kind: input, shape index: {}]   ;;  %s1622_s2 = inlined_call_operand.vmem [shape: f32[4,128], index: 2, kind: input, shape index: {}]   ;;  %s1623_s3 = inlined_call_operand.hbm [shape: f32[1,1], index: 3, kind: output, shape index: {}]  }
   0x1   :  { %9 = vsyncpa [#allocation7], 0 }
   0x2   :  { %10 = vsyncpa [#allocation5], 0  ;;  %s1305_s12 = smov [#allocation3]   ;;  %s1245_s16 = scalar_lea.hbm %s1620_s0, 2048 }
   0x3   :  { %s16_s13 = sshll.u32 %s1305_s12, 4  ;;  %p1246_p0 = scmp.ne.s32.totalorder %s1620_s0, %s1245_s16  ;;  %s17_s13 = int_to_ptr.vmem [resolvable:$true] %s16_s13 }
   0x4   :  { %p1249_p1 = scmp.lt.u32.totalorder %s1245_s16, %s1620_s0 }
   0x6   :  { %p1251_p2 = pnand %p1249_p1, %p1246_p0 }
   0x8   :  { %1254 = shalt.err (!%p1251_p2)
}
   0x9   :  { %s1255_s21 = scalar_lea.vmem %s17_s13, 2048  ;;  %p1260_p4 = scmp.lt.s32.totalorder %s17_s13, %s17_s13 }
   0xa   :  { %p1256_p3 = scmp.ne.s32.totalorder %s17_s13, %s1255_s21  ;;  %p1261_p5 = scmp.lt.s32.totalorder %s1255_s21, %s1255_s21 }
   0xc   :  { %p1262_p6 = por %p1261_p5, %p1260_p4 }
   0xe   :  { %p1263_p7 = pnand %p1262_p6, %p1256_p3 }
  0x10   :  { %1266 = shalt.err (!%p1263_p7)
}
  0x11   :  { %s1306_s22 = smov 128   ;;  %s1307_s23 = smov 8  }
  0x12   :  { %22 = dma.hbm_to_vmem [thread:$0]  %s1620_s0, 2048, %s17_s13, [#allocation4], %s1306_s22, %s1306_s22, %s1307_s23  }
  0x13   :  { %s1308_s26 = smov [#allocation6]   ;;  %s1267_s30 = scalar_lea.hbm %s1621_s1, 64 }
  0x14   :  { %s32_s27 = sshll.u32 %s1308_s26, 4  ;;  %p1268_p8 = scmp.ne.s32.totalorder %s1621_s1, %s1267_s30  ;;  %s33_s27 = int_to_ptr.vmem [resolvable:$true] %s32_s27 }
  0x15   :  { %p1271_p9 = scmp.lt.u32.totalorder %s1267_s30, %s1621_s1 }
  0x17   :  { %p1273_p10 = pnand %p1271_p9, %p1268_p8 }
  0x19   :  { %1276 = shalt.err (!%p1273_p10)
}
  0x1a   :  { %s1277_s8 = scalar_lea.vmem %s33_s27, 64  ;;  %p1282_p12 = scmp.lt.s32.totalorder %s33_s27, %s33_s27 }
  0x1b   :  { %p1278_p11 = scmp.ne.s32.totalorder %s33_s27, %s1277_s8  ;;  %p1283_p13 = scmp.lt.s32.totalorder %s1277_s8, %s1277_s8 }
  0x1d   :  { %p1284_p0 = por %p1283_p13, %p1282_p12 }
  0x1f   :  { %p1285_p1 = pnand %p1284_p0, %p1278_p11 }
  0x21   :  { %1288 = shalt.err (!%p1285_p1)
}
  0x22   :  { %35 = dma.hbm_to_vmem [thread:$0]  %s1621_s1, 64, %s33_s27, [#allocation7]  }
  0x23   :  { %1299 = dma.done.wait [#allocation4], 2048  }
  0x24   :  { %1300 = vsyncadd [#allocation4], 4294965248 }
  0x25   :  { %1301 = dma.done.wait [#allocation7], 64  }
  0x26   :  { %1302 = vsyncadd [#allocation7], 4294967232  ;;  %v1309_v0 = vmov 0.0|0.0   ;;  %v1310_v1 = vmov 0.0   ;;  %vm1311_vm0 = vmmov 0   ;;  %v69_v2 = vld [vmem:[#allocation3] sm:$0xff] }
  0x27   :  { %1082 = vmatprep.subr.bf16.mxu1 %v1309_v0  ;;  %1154 = vmatprep.subr.bf16.mxu0 %v1309_v0  ;;  %66 = vst [vmem:[#allocation2] sm:$0xf] %v1310_v1  ;;  %v70_v3 = vld [vmem:[#allocation3 + $0x8] sm:$0xff]  ;;  %v71_v4 = vld [vmem:[#allocation3 + $0x10] sm:$0xff]  ;;  %v86_v5 = vand.u32 4294901760, %v69_v2  ;;  %v72_v7 = vld [vmem:[#allocation3 + $0x18] sm:$0xff] }
  0x28   :  { %904 = vmatprep.mubr.msk.f32.mxu1 %vm1311_vm0, %v1310_v1  ;;  %1009 = vmatprep.mubr.msk.f32.mxu0 %vm1311_vm0, %v1310_v1  ;;  %v89_v6 = vand.u32 4294901760, %v70_v3  ;;  %v92_v8 = vand.u32 4294901760, %v71_v4  ;;  %v95_v9 = vand.u32 4294901760, %v72_v7  ;;  %v73_v10 = vld [vmem:[#allocation3 + $0x20] sm:$0xff]  ;;  %v74_v11 = vld [vmem:[#allocation3 + $0x28] sm:$0xff]  ;;  %v75_v16 = vld [vmem:[#allocation3 + $0x30] sm:$0xff] }
  0x29   :  { %v98_v14 = vand.u32 4294901760, %v73_v10  ;;  %v101_v15 = vand.u32 4294901760, %v74_v11  ;;  %v76_v17 = vld [vmem:[#allocation3 + $0x38] sm:$0xff]  ;;  %v104_v19 = vand.u32 4294901760, %v75_v16  ;;  %v1378_v21 = vld [vmem:[#allocation3 + $0x40] sm:$0xff]  ;;  %v1380_v22 = vld [vmem:[#allocation3 + $0x48] sm:$0xff]  ;;  %v1397_v29 = vsub.f32 %v69_v2, %v86_v5 }
  0x2a   :  { %v1364_v12 = vpack.c.bf16 %v89_v6, %v86_v5  ;;  %v1368_v13 = vpack.c.bf16 %v95_v9, %v92_v8  ;;  %v107_v20 = vand.u32 4294901760, %v76_v17  ;;  %v110_v24 = vand.u32 4294901760, %v1378_v21  ;;  %v67_v26 = vld [vmem:[%s1622_s2] sm:$0xf]  ;;  %v1393_v27 = vld [vmem:[#allocation3 + $0x50] sm:$0xff]  ;;  %v1409_v35 = vld [vmem:[#allocation3 + $0x60] sm:$0xff] }
  0x2b   :  { %v1374_v18 = vpack.c.bf16 %v101_v15, %v98_v14  ;;  %v113_v25 = vand.u32 4294901760, %v1380_v22  ;;  %v1395_v28 = vld [vmem:[#allocation3 + $0x58] sm:$0xff]  ;;  %v1399_v30 = vand.u32 4294901760, %v67_v26  ;;  %v1401_v31 = vsub.f32 %v70_v3, %v89_v6  ;;  %v1413_v36 = vld [vmem:[#allocation3 + $0x68] sm:$0xff]  ;;  %v1432_v43 = vld [vmem:[#allocation3 + $0x70] sm:$0xff]  ;;  %s1289_s13 = scalar_lea.hbm %s1623_s3, 16 }
  0x2c   :  { %1084 = vmatpush3.bf16.msra.mxu1 %v1364_v12  ;;  %1156 = vmatpush3.bf16.msra.mxu0 %v1364_v12  ;;  %v1384_v23 = vpack.c.bf16 %v107_v20, %v104_v19  ;;  %v116_v33 = vand.u32 4294901760, %v1393_v27  ;;  %v119_v34 = vand.u32 4294901760, %v1395_v28  ;;  %v1415_v37 = vsub.f32 %v71_v4, %v92_v8  ;;  %v1434_v44 = vld [vmem:[#allocation3 + $0x78] sm:$0xff]  ;;  %p1290_p2 = scmp.ne.s32.totalorder %s1623_s3, %s1289_s13  ;;  %p1293_p3 = scmp.lt.u32.totalorder %s1289_s13, %s1623_s3 }
  0x2d   :  { %1085 = vmatprep.subr.bf16.mxu1 %v1309_v0  ;;  %1157 = vmatprep.subr.bf16.mxu0 %v1309_v0  ;;  %v1405_v32 = vpack.c.bf16 %v113_v25, %v110_v24  ;;  %v1417_v38 = vsub.f32 %v72_v7, %v95_v9  ;;  %v122_v39 = vand.u32 4294901760, %v1409_v35  ;;  %v1421_v40 = vsub.f32 %v67_v26, %v1399_v30 }
  0x2e   :  { %v1429_v41 = vpack.c.bf16 %v119_v34, %v116_v33  ;;  %v125_v42 = vand.u32 4294901760, %v1413_v36  ;;  %v179_v45 = vand.u32 4294901760, %v1397_v29  ;;  %v186_v46 = vand.u32 4294901760, %v1401_v31  ;;  %p1295_p4 = pnand %p1293_p3, %p1290_p2 }
  0x2f   :  { %v1440_v47 = vsub.f32 %v73_v10, %v98_v14  ;;  %v1442_v48 = vsub.f32 %v74_v11, %v101_v15  ;;  %v128_v49 = vand.u32 4294901760, %v1432_v43  ;;  %v131_v50 = vand.u32 4294901760, %v1434_v44 }
  0x30   :  { %1087 = vmatpush3.bf16.msra.mxu1 %v1368_v13  ;;  %1159 = vmatpush3.bf16.msra.mxu0 %v1368_v13  ;;  %v168_v51 = vand.u32 4294901760, %v1421_v40  ;;  %v193_v52 = vand.u32 4294901760, %v1415_v37  ;;  %v1454_v53 = vpack.c.bf16 %v125_v42, %v122_v39  ;;  %v180_v54 = vsub.f32 %v1397_v29, %v179_v45 }
  0x31   :  { %1088 = vmatprep.subr.bf16.mxu1 %v1309_v0  ;;  %1160 = vmatprep.subr.bf16.mxu0 %v1309_v0  ;;  %v187_v55 = vsub.f32 %v1401_v31, %v186_v46  ;;  %v200_v56 = vand.u32 4294901760, %v1417_v38  ;;  %v1461_v57 = vsub.f32 %v75_v16, %v104_v19  ;;  %v1463_v58 = vsub.f32 %v76_v17, %v107_v20 }
  0x32   :  { %v169_v59 = vsub.f32 %v1421_v40, %v168_v51  ;;  %v194_v60 = vsub.f32 %v1415_v37, %v193_v52  ;;  %v207_v61 = vand.u32 4294901760, %v1440_v47  ;;  %v214_v62 = vand.u32 4294901760, %v1442_v48 }
  0x33   :  { %v1475_v63 = vpack.c.bf16 %v131_v50, %v128_v49  ;;  %v181_v2 = vand.u32 4294901760, %v180_v54  ;;  %v188_v3 = vand.u32 4294901760, %v187_v55  ;;  %v201_v4 = vsub.f32 %v1417_v38, %v200_v56 }
  0x34   :  { %1090 = vmatpush3.bf16.msra.mxu1 %v1374_v18  ;;  %1162 = vmatpush3.bf16.msra.mxu0 %v1374_v18  ;;  %v1481_v5 = vsub.f32 %v1378_v21, %v110_v24  ;;  %v1484_v6 = vsub.f32 %v1380_v22, %v113_v25  ;;  %v1179_v7 = vpack.c.bf16 %v186_v46, %v179_v45  ;;  %v170_v8 = vand.u32 4294901760, %v169_v59 }
  0x35   :  { %1091 = vmatprep.subr.bf16.mxu1 %v1309_v0  ;;  %1163 = vmatprep.subr.bf16.mxu0 %v1309_v0  ;;  %v195_v9 = vand.u32 4294901760, %v194_v60  ;;  %v208_v10 = vsub.f32 %v1440_v47, %v207_v61  ;;  %v215_v11 = vsub.f32 %v1442_v48, %v214_v62  ;;  %v1107_v14 = vpack.c.bf16 %v188_v3, %v181_v2 }
  0x36   :  { %v202_v15 = vand.u32 4294901760, %v201_v4  ;;  %v221_v16 = vand.u32 4294901760, %v1461_v57  ;;  %v228_v17 = vand.u32 4294901760, %v1463_v58  ;;  %v1497_v19 = vsub.f32 %v1393_v27, %v116_v33 }
  0x37   :  { %v1502_v20 = vsub.f32 %v1395_v28, %v119_v34  ;;  %v1182_v21 = vpack.c.bf16 %v200_v56, %v193_v52  ;;  %v209_v22 = vand.u32 4294901760, %v208_v10  ;;  %v216_v24 = vand.u32 4294901760, %v215_v11 }
  0x38   :  { %1093 = vmatpush3.bf16.msra.mxu1 %v1384_v23  ;;  %1165 = vmatpush3.bf16.msra.mxu0 %v1384_v23  ;;  %v235_v25 = vand.u32 4294901760, %v1481_v5  ;;  %v1110_v26 = vpack.c.bf16 %v202_v15, %v195_v9  ;;  %v222_v45 = vsub.f32 %v1461_v57, %v221_v16  ;;  %v229_v27 = vsub.f32 %v1463_v58, %v228_v17 }
  0x39   :  { %1094 = vmatprep.subr.bf16.mxu1 %v1309_v0  ;;  %1166 = vmatprep.subr.bf16.mxu0 %v1309_v0  ;;  %v242_v33 = vand.u32 4294901760, %v1484_v6  ;;  %v1513_v28 = vsub.f32 %v1409_v35, %v122_v39  ;;  %v1518_v34 = vsub.f32 %v1413_v36, %v125_v42  ;;  %v1113_v46 = vpack.c.bf16 %v216_v24, %v209_v22 }
  0x3a   :  { %v236_v52 = vsub.f32 %v1481_v5, %v235_v25  ;;  %v249_v54 = vand.u32 4294901760, %v1497_v19  ;;  %v223_v35 = vand.u32 4294901760, %v222_v45  ;;  %v230_v39 = vand.u32 4294901760, %v229_v27 }
  0x3b   :  { %v243_v55 = vsub.f32 %v1484_v6, %v242_v33  ;;  %v256_v36 = vand.u32 4294901760, %v1502_v20  ;;  %v1533_v42 = vsub.f32 %v1432_v43, %v128_v49  ;;  %v1538_v56 = vsub.f32 %v1434_v44, %v131_v50 }
  0x3c   :  { %1096 = vmatpush3.bf16.msra.mxu1 %v1405_v32  ;;  %1168 = vmatpush3.bf16.msra.mxu0 %v1405_v32  ;;  %v1188_v59 = vpack.c.bf16 %v228_v17, %v221_v16  ;;  %v237_v60 = vand.u32 4294901760, %v236_v52  ;;  %v1116_v2 = vpack.c.bf16 %v230_v39, %v223_v35  ;;  %v270_v43 = vand.u32 4294901760, %v1518_v34 }
  0x3d   :  { %1097 = vmatprep.subr.bf16.mxu1 %v1309_v0  ;;  %1169 = vmatprep.subr.bf16.mxu0 %v1309_v0  ;;  %v244_v3 = vand.u32 4294901760, %v243_v55  ;;  %v257_v4 = vsub.f32 %v1502_v20, %v256_v36  ;;  %v1191_v44 = vpack.c.bf16 %v242_v33, %v235_v25  ;;  %v284_v11 = vand.u32 4294901760, %v1538_v56 }
  0x3e   :  { %v271_v10 = vsub.f32 %v1518_v34, %v270_v43  ;;  %vm736_vm1 = vcmask 1043456  }
  0x3f   :  { %v258_v9 = vand.u32 4294901760, %v257_v4  ;;  %v285_v22 = vsub.f32 %v1538_v56, %v284_v11 }
  0x40   :  { %1099 = vmatpush3.bf16.msra.mxu1 %v1429_v41  ;;  %1171 = vmatpush3.bf16.msra.mxu0 %v1429_v41  ;;  %v272_v17 = vand.u32 4294901760, %v271_v10 }
  0x41   :  { %1100 = vmatprep.subr.bf16.mxu1 %v1309_v0  ;;  %1172 = vmatprep.subr.bf16.mxu0 %v1309_v0  ;;  %v286_v45 = vand.u32 4294901760, %v285_v22 }
  0x44   :  { %1102 = vmatpush3.bf16.msra.mxu1 %v1454_v53  ;;  %1174 = vmatpush3.bf16.msra.mxu0 %v1454_v53 }
  0x45   :  { %1103 = vmatprep.subr.bf16.mxu1 %v1309_v0  ;;  %1175 = vmatprep.subr.bf16.mxu0 %v1309_v0 }
  0x48   :  { %1105 = vmatpush3.bf16.msra.mxu1 %v1475_v63  ;;  %1177 = vmatpush3.bf16.msra.mxu0 %v1475_v63 }
  0x49   :  { %1106 = vmatprep.subr.bf16.mxu1 %v1309_v0  ;;  %1178 = vmatprep.subr.bf16.mxu0 %v1309_v0 }
  0x4b   :  { %905 = vmatmul.mubr.f32.vlgmr.msra.gmra.mrb[0].mxu1 %v170_v8  ;;  %1010 = vmatmul.mubr.f32.vlgmr.msra.gmra.mrb[0].mxu0 %v168_v51  ;;  %v1185_v51 = vpack.c.bf16 %v214_v62, %v207_v61  ;;  %v250_v61 = vsub.f32 %v1497_v19, %v249_v54  ;;  %v263_v62 = vand.u32 4294901760, %v1513_v28  ;;  %v1119_v8 = vpack.c.bf16 %v244_v3, %v237_v60 }
  0x4c   :  { %1108 = vmatpush3.bf16.msra.mxu1 %v1107_v14  ;;  %1180 = vmatpush3.bf16.msra.mxu0 %v1179_v7  ;;  %v277_v7 = vand.u32 4294901760, %v1533_v42  ;;  %v1194_v14 = vpack.c.bf16 %v256_v36, %v249_v54 }
  0x4d   :  { %1109 = vmatprep.subr.bf16.mxu1 %v1309_v0  ;;  %1181 = vmatprep.subr.bf16.mxu0 %v1309_v0  ;;  %v251_v49 = vand.u32 4294901760, %v250_v61  ;;  %v264_v50 = vsub.f32 %v1513_v28, %v263_v62  ;;  %v1197_v25 = vpack.c.bf16 %v270_v43, %v263_v62 }
  0x4e   :  { %939 = vmatprep.mubr.msk.f32.mxu1 %vm1311_vm0, %v1310_v1  ;;  %1044 = vmatprep.mubr.msk.f32.mxu0 %vm1311_vm0, %v1310_v1  ;;  %v1200_v33 = vpack.c.bf16 %v284_v11, %v277_v7 }
  0x4f   :  { %v265_v15 = vand.u32 4294901760, %v264_v50  ;;  %v1122_v16 = vpack.c.bf16 %v258_v9, %v251_v49 }
  0x50   :  { %1111 = vmatpush3.bf16.msra.mxu1 %v1110_v26  ;;  %1183 = vmatpush3.bf16.msra.mxu0 %v1182_v21  ;;  %v278_v21 = vsub.f32 %v1533_v42, %v277_v7 }
  0x51   :  { %1112 = vmatprep.subr.bf16.mxu1 %v1309_v0  ;;  %1184 = vmatprep.subr.bf16.mxu0 %v1309_v0  ;;  %v1125_v24 = vpack.c.bf16 %v272_v17, %v265_v15 }
  0x52   :  { %v279_v26 = vand.u32 4294901760, %v278_v21 }
  0x54   :  { %1114 = vmatpush3.bf16.msra.mxu1 %v1113_v46  ;;  %1186 = vmatpush3.bf16.msra.mxu0 %v1185_v51  ;;  %v1128_v27 = vpack.c.bf16 %v286_v45, %v279_v26  ;;  %v1131_v46 = vpack.c.bf16 %v1401_v31, %v1397_v29  ;;  %v1134_v51 = vpack.c.bf16 %v1417_v38, %v1415_v37 }
  0x55   :  { %1115 = vmatprep.subr.bf16.mxu1 %v1309_v0  ;;  %1187 = vmatprep.subr.bf16.mxu0 %v1309_v0  ;;  %v1137_v29 = vpack.c.bf16 %v1442_v48, %v1440_v47 }
  0x58   :  { %1117 = vmatpush3.bf16.msra.mxu1 %v1116_v2  ;;  %1189 = vmatpush3.bf16.msra.mxu0 %v1188_v59 }
  0x59   :  { %1118 = vmatprep.subr.bf16.mxu1 %v1309_v0  ;;  %1190 = vmatprep.subr.bf16.mxu0 %v1309_v0 }
  0x5c   :  { %1120 = vmatpush3.bf16.msra.mxu1 %v1119_v8  ;;  %1192 = vmatpush3.bf16.msra.mxu0 %v1191_v44 }
  0x5d   :  { %1121 = vmatprep.subr.bf16.mxu1 %v1309_v0  ;;  %1193 = vmatprep.subr.bf16.mxu0 %v1309_v0 }
  0x60   :  { %1123 = vmatpush3.bf16.msra.mxu1 %v1122_v16  ;;  %1195 = vmatpush3.bf16.msra.mxu0 %v1194_v14 }
  0x61   :  { %1124 = vmatprep.subr.bf16.mxu1 %v1309_v0  ;;  %1196 = vmatprep.subr.bf16.mxu0 %v1309_v0 }
  0x64   :  { %1126 = vmatpush3.bf16.msra.mxu1 %v1125_v24  ;;  %1198 = vmatpush3.bf16.msra.mxu0 %v1197_v25 }
  0x65   :  { %1127 = vmatprep.subr.bf16.mxu1 %v1309_v0  ;;  %1199 = vmatprep.subr.bf16.mxu0 %v1309_v0 }
  0x68   :  { %1129 = vmatpush3.bf16.msra.mxu1 %v1128_v27  ;;  %1201 = vmatpush3.bf16.msra.mxu0 %v1200_v33 }
  0x69   :  { %1130 = vmatprep.subr.bf16.mxu1 %v1309_v0  ;;  %1202 = vmatprep.subr.bf16.mxu0 %v1309_v0 }
  0x6b   :  { %940 = vmatmul.mubr.f32.vlgmr.msra.gmra.mrb[0].mxu1 %v1399_v30  ;;  %1045 = vmatmul.mubr.f32.vlgmr.msra.gmra.mrb[0].mxu0 %v1399_v30 }
  0x6c   :  { %1132 = vmatpush3.bf16.msra.mxu1 %v1131_v46  ;;  %1204 = vmatpush3.bf16.msra.mxu0 %v1364_v12  ;;  %v1140_v12 = vpack.c.bf16 %v1463_v58, %v1461_v57 }
  0x6d   :  { %1133 = vmatprep.subr.bf16.mxu1 %v1309_v0  ;;  %1205 = vmatprep.subr.bf16.mxu0 %v1309_v0 }
  0x6e   :  { %974 = vmatprep.mubr.msk.f32.mxu1 %vm1311_vm0, %v1310_v1  ;;  %1079 = vmatprep.mubr.msk.f32.mxu0 %vm1311_vm0, %v1310_v1  ;;  %v1143_v1 = vpack.c.bf16 %v1484_v6, %v1481_v5 }
  0x70   :  { %1135 = vmatpush3.bf16.msra.mxu1 %v1134_v51  ;;  %1207 = vmatpush3.bf16.msra.mxu0 %v1368_v13  ;;  %v1146_v13 = vpack.c.bf16 %v1502_v20, %v1497_v19 }
  0x71   :  { %1136 = vmatprep.subr.bf16.mxu1 %v1309_v0  ;;  %1208 = vmatprep.subr.bf16.mxu0 %v1309_v0 }
  0x74   :  { %1138 = vmatpush3.bf16.msra.mxu1 %v1137_v29  ;;  %1210 = vmatpush3.bf16.msra.mxu0 %v1374_v18  ;;  %v1149_v18 = vpack.c.bf16 %v1518_v34, %v1513_v28 }
  0x75   :  { %1139 = vmatprep.subr.bf16.mxu1 %v1309_v0  ;;  %1211 = vmatprep.subr.bf16.mxu0 %v1309_v0 }
  0x78   :  { %1141 = vmatpush3.bf16.msra.mxu1 %v1140_v12  ;;  %1213 = vmatpush3.bf16.msra.mxu0 %v1384_v23  ;;  %v1152_v23 = vpack.c.bf16 %v1538_v56, %v1533_v42 }
  0x79   :  { %1142 = vmatprep.subr.bf16.mxu1 %v1309_v0  ;;  %1214 = vmatprep.subr.bf16.mxu0 %v1309_v0 }
  0x7c   :  { %1144 = vmatpush3.bf16.msra.mxu1 %v1143_v1  ;;  %1216 = vmatpush3.bf16.msra.mxu0 %v1405_v32  ;;  %v68_v32 = vld [vmem:[#allocation6] sm:$0xf] }
  0x7d   :  { %1145 = vmatprep.subr.bf16.mxu1 %v1309_v0  ;;  %1217 = vmatprep.subr.bf16.mxu0 %v1309_v0 }
  0x80   :  { %1147 = vmatpush3.bf16.msra.mxu1 %v1146_v13  ;;  %1219 = vmatpush3.bf16.msra.mxu0 %v1429_v41 }
  0x81   :  { %1148 = vmatprep.subr.bf16.mxu1 %v1309_v0  ;;  %1220 = vmatprep.subr.bf16.mxu0 %v1309_v0 }
  0x84   :  { %1150 = vmatpush3.bf16.msra.mxu1 %v1149_v18  ;;  %1222 = vmatpush3.bf16.msra.mxu0 %v1454_v53  ;;  %v728_v53 = vld [vmem:[#allocation2] sm:$0xf] }
  0x85   :  { %1151 = vmatprep.subr.bf16.mxu1 %v1309_v0  ;;  %1223 = vmatprep.subr.bf16.mxu0 %v1309_v0 }
  0x88   :  { %1153 = vmatpush3.bf16.msra.mxu1 %v1152_v23  ;;  %1225 = vmatpush3.bf16.msra.mxu0 %v1475_v63 }
  0x8b   :  { %975 = vmatmul.mubr.f32.vlgmr.msra.gmra.mrb[0].mxu1 %v1421_v40  ;;  %1080 = vmatmul.mubr.f32.vlgmr.msra.gmra.mrb[0].mxu0 %v1399_v30 }
 0x15e   :  { %v427_v31 = vpop.f32.mrb[0].mxu1  ;;  %v722_v37 = vpop.f32.mrb[0].mxu0 }
 0x15f   :  { %v1226_v38 = vadd.f32 %v722_v37, %v427_v31  ;;  %v976_v41 = vpop.f32.mrb[1].mxu1  ;;  %v1081_v47 = vpop.f32.mrb[1].mxu0 }
 0x161   :  { %v726_v48 = vsub.f32 %v68_v32, %v1226_v38 }
 0x163   :  { %v727_v57 = vmul.f32 %v726_v48, %v726_v48 }
 0x165   :  { %v730_v58 = vadd.f32 %v728_v53, %v727_v57 }
 0x167   :  { %731 = vst [vmem:[#allocation2] sm:$0xf] %v730_v58 }
 0x16e   :  { %v735_v0 = vld [vmem:[#allocation2] sm:$0xf] }
 0x16f   :  { %v737_v5 = vsel %vm736_vm1, %v735_v0, 0.0 }
 0x170   :  { %738 = vadd.xlane.f32.xlu0 %v737_v5 }
 0x1fd   :  { %v739_v63 = vpop.xlane.xlu0 %738 }
 0x1fe   :  { %v740_v6 = vrot.slane %v739_v63, 4 }
 0x200   :  { %v741_v40 = vadd.f32 %v740_v6, %v739_v63 }
 0x202   :  { %v742_v19 = vrot.slane %v741_v40, 2 }
 0x204   :  { %v743_v30 = vadd.f32 %v742_v19, %v741_v40 }
 0x206   :  { %v744_v20 = vrot.slane %v743_v30, 1 }
 0x208   :  { %v745_v28 = vadd.f32 %v744_v20, %v743_v30 }
 0x20a   :  { %1235 = vpush %v745_v28 }
 0x23b   :  { %s1236_s2 = spop %1235 }
 0x23c   :  { %748 = sst [smem:[#allocation8]] %s1236_s2 }
 0x23d   :  { %1298 = shalt.err (!%p1295_p4)
}
 0x23e   :  { %s1312_s18 = smov [#allocation8]  }
 0x23f   :  { %756 = dma.smem_to_hbm %s1312_s18, 16, %s1623_s3, [#allocation5]  }
 0x240   :  { %1303 = dma.done.wait [#allocation5], 16  }
 0x241   :  { %1304 = vsyncadd [#allocation5], 4294967280 }
 0x242   :  { %760 = sfence }
 0x243   :  { %761 = vsyncpa [#allocation4], 1 }
 0x244   :  { %762 = vsyncpa [#allocation7], 1 }
 0x245   :  { %763 = vsyncpa [#allocation5], 1 }

// kernel: tpu_custom_call.1
= control target key start
LH: loop header
LB: loop body
LE: loop exit
PB: predicated region body
PF: predicated region fallthrough
CT: control target
= control target key end

     0   :  { %8 = vsyncpa [#allocation4], 0  ;;  %s413_s0 = inlined_call_operand.hbm [shape: f32[128,128], index: 0, kind: input, shape index: {}]   ;;  %s414_s1 = inlined_call_operand.hbm [shape: f32[4,128], index: 1, kind: input, shape index: {}]   ;;  %s415_s2 = inlined_call_operand.vmem [shape: f32[4,128], index: 2, kind: input, shape index: {}]   ;;  %s416_s3 = inlined_call_operand.hbm [shape: f32[1,1], index: 3, kind: output, shape index: {}]  }
   0x1   :  { %9 = vsyncpa [#allocation7], 0 }
   0x2   :  { %10 = vsyncpa [#allocation5], 0  ;;  %s346_s12 = smov [#allocation3]   ;;  %s286_s16 = scalar_lea.hbm %s413_s0, 2048 }
   0x3   :  { %s16_s13 = sshll.u32 %s346_s12, 4  ;;  %p287_p0 = scmp.ne.s32.totalorder %s413_s0, %s286_s16  ;;  %s17_s13 = int_to_ptr.vmem [resolvable:$true] %s16_s13 }
   0x4   :  { %p290_p1 = scmp.lt.u32.totalorder %s286_s16, %s413_s0 }
   0x6   :  { %p292_p2 = pnand %p290_p1, %p287_p0 }
   0x8   :  { %295 = shalt.err (!%p292_p2)
}
   0x9   :  { %s296_s21 = scalar_lea.vmem %s17_s13, 2048  ;;  %p301_p4 = scmp.lt.s32.totalorder %s17_s13, %s17_s13 }
   0xa   :  { %p297_p3 = scmp.ne.s32.totalorder %s17_s13, %s296_s21  ;;  %p302_p5 = scmp.lt.s32.totalorder %s296_s21, %s296_s21 }
   0xc   :  { %p303_p6 = por %p302_p5, %p301_p4 }
   0xe   :  { %p304_p7 = pnand %p303_p6, %p297_p3 }
  0x10   :  { %307 = shalt.err (!%p304_p7)
}
  0x11   :  { %s347_s22 = smov 128   ;;  %s348_s23 = smov 8  }
  0x12   :  { %22 = dma.hbm_to_vmem [thread:$0]  %s413_s0, 2048, %s17_s13, [#allocation4], %s347_s22, %s347_s22, %s348_s23  }
  0x13   :  { %s349_s26 = smov [#allocation6]   ;;  %s308_s30 = scalar_lea.hbm %s414_s1, 64 }
  0x14   :  { %s32_s27 = sshll.u32 %s349_s26, 4  ;;  %p309_p8 = scmp.ne.s32.totalorder %s414_s1, %s308_s30  ;;  %s33_s27 = int_to_ptr.vmem [resolvable:$true] %s32_s27 }
  0x15   :  { %p312_p9 = scmp.lt.u32.totalorder %s308_s30, %s414_s1 }
  0x17   :  { %p314_p10 = pnand %p312_p9, %p309_p8 }
  0x19   :  { %317 = shalt.err (!%p314_p10)
}
  0x1a   :  { %s318_s8 = scalar_lea.vmem %s33_s27, 64  ;;  %p323_p12 = scmp.lt.s32.totalorder %s33_s27, %s33_s27 }
  0x1b   :  { %p319_p11 = scmp.ne.s32.totalorder %s33_s27, %s318_s8  ;;  %p324_p13 = scmp.lt.s32.totalorder %s318_s8, %s318_s8 }
  0x1d   :  { %p325_p0 = por %p324_p13, %p323_p12 }
  0x1f   :  { %p326_p1 = pnand %p325_p0, %p319_p11 }
  0x21   :  { %329 = shalt.err (!%p326_p1)
}
  0x22   :  { %35 = dma.hbm_to_vmem [thread:$0]  %s414_s1, 64, %s33_s27, [#allocation7]  }
  0x23   :  { %340 = dma.done.wait [#allocation4], 2048  }
  0x24   :  { %341 = vsyncadd [#allocation4], 4294965248 }
  0x25   :  { %342 = dma.done.wait [#allocation7], 64  }
  0x26   :  { %343 = vsyncadd [#allocation7], 4294967232  ;;  %v350_v0 = vmov 0.0|0.0   ;;  %v351_v1 = vmov 0.0   ;;  %vm352_vm0 = vmmov 0   ;;  %v69_v2 = vld [vmem:[#allocation3] sm:$0xff] }
  0x27   :  { %252 = vmatprep.subr.bf16.mxu0 %v350_v0  ;;  %66 = vst [vmem:[#allocation2] sm:$0xf] %v351_v1  ;;  %249 = vmatprep.mubr.msk.f32.mxu0 %vm352_vm0, %v351_v1  ;;  %v70_v3 = vld [vmem:[#allocation3 + $0x8] sm:$0xff]  ;;  %v71_v4 = vld [vmem:[#allocation3 + $0x10] sm:$0xff]  ;;  %v72_v6 = vld [vmem:[#allocation3 + $0x18] sm:$0xff]  ;;  %vm166_vm1 = vcmask 1043456  }
  0x28   :  { %v253_v5 = vpack.c.bf16 %v70_v3, %v69_v2  ;;  %v256_v7 = vpack.c.bf16 %v72_v6, %v71_v4  ;;  %v73_v8 = vld [vmem:[#allocation3 + $0x20] sm:$0xff]  ;;  %v74_v9 = vld [vmem:[#allocation3 + $0x28] sm:$0xff]  ;;  %v75_v11 = vld [vmem:[#allocation3 + $0x30] sm:$0xff]  ;;  %s330_s13 = scalar_lea.hbm %s416_s3, 16 }
  0x29   :  { %v259_v10 = vpack.c.bf16 %v74_v9, %v73_v8  ;;  %v76_v12 = vld [vmem:[#allocation3 + $0x38] sm:$0xff]  ;;  %v77_v14 = vld [vmem:[#allocation3 + $0x40] sm:$0xff]  ;;  %v78_v15 = vld [vmem:[#allocation3 + $0x48] sm:$0xff]  ;;  %p331_p2 = scmp.ne.s32.totalorder %s416_s3, %s330_s13  ;;  %p334_p3 = scmp.lt.u32.totalorder %s330_s13, %s416_s3 }
  0x2a   :  { %254 = vmatpush3.bf16.msra.mxu0 %v253_v5  ;;  %v262_v13 = vpack.c.bf16 %v76_v12, %v75_v11  ;;  %v265_v16 = vpack.c.bf16 %v78_v15, %v77_v14  ;;  %v79_v17 = vld [vmem:[#allocation3 + $0x50] sm:$0xff]  ;;  %v80_v18 = vld [vmem:[#allocation3 + $0x58] sm:$0xff]  ;;  %v81_v20 = vld [vmem:[#allocation3 + $0x60] sm:$0xff] }
  0x2b   :  { %255 = vmatprep.subr.bf16.mxu0 %v350_v0  ;;  %v268_v19 = vpack.c.bf16 %v80_v18, %v79_v17  ;;  %v82_v21 = vld [vmem:[#allocation3 + $0x68] sm:$0xff]  ;;  %v83_v23 = vld [vmem:[#allocation3 + $0x70] sm:$0xff]  ;;  %v84_v24 = vld [vmem:[#allocation3 + $0x78] sm:$0xff]  ;;  %p336_p4 = pnand %p334_p3, %p331_p2 }
  0x2c   :  { %v271_v22 = vpack.c.bf16 %v82_v21, %v81_v20  ;;  %v274_v25 = vpack.c.bf16 %v84_v24, %v83_v23  ;;  %v67_v26 = vld [vmem:[%s415_s2] sm:$0xf]  ;;  %v68_v27 = vld [vmem:[#allocation6] sm:$0xf] }
  0x2e   :  { %257 = vmatpush3.bf16.msra.mxu0 %v256_v7  ;;  %v158_v32 = vld [vmem:[#allocation2] sm:$0xf] }
  0x2f   :  { %258 = vmatprep.subr.bf16.mxu0 %v350_v0 }
  0x32   :  { %260 = vmatpush3.bf16.msra.mxu0 %v259_v10 }
  0x33   :  { %261 = vmatprep.subr.bf16.mxu0 %v350_v0 }
  0x36   :  { %263 = vmatpush3.bf16.msra.mxu0 %v262_v13 }
  0x37   :  { %264 = vmatprep.subr.bf16.mxu0 %v350_v0 }
  0x3a   :  { %266 = vmatpush3.bf16.msra.mxu0 %v265_v16 }
  0x3b   :  { %267 = vmatprep.subr.bf16.mxu0 %v350_v0 }
  0x3e   :  { %269 = vmatpush3.bf16.msra.mxu0 %v268_v19 }
  0x3f   :  { %270 = vmatprep.subr.bf16.mxu0 %v350_v0 }
  0x42   :  { %272 = vmatpush3.bf16.msra.mxu0 %v271_v22 }
  0x43   :  { %273 = vmatprep.subr.bf16.mxu0 %v350_v0 }
  0x46   :  { %275 = vmatpush3.bf16.msra.mxu0 %v274_v25 }
  0x49   :  { %250 = vmatmul.mubr.f32.vlgmr.msra.gmra.mrb[0].mxu0 %v67_v26 }
 0x11c   :  { %v151_v28 = vpop.f32.mrb[0].mxu0 }
 0x11d   :  { %v155_v29 = vsub.f32 %v67_v26, %v151_v28  ;;  %v251_v30 = vpop.f32.mrb[1].mxu0 }
 0x11f   :  { %v156_v31 = vsub.f32 %v68_v27, %v155_v29 }
 0x121   :  { %v157_v33 = vmul.f32 %v156_v31, %v156_v31 }
 0x123   :  { %v160_v34 = vadd.f32 %v158_v32, %v157_v33 }
 0x125   :  { %161 = vst [vmem:[#allocation2] sm:$0xf] %v160_v34 }
 0x12c   :  { %v165_v35 = vld [vmem:[#allocation2] sm:$0xf] }
 0x12d   :  { %v167_v36 = vsel %vm166_vm1, %v165_v35, 0.0 }
 0x12e   :  { %168 = vadd.xlane.f32.xlu0 %v167_v36 }
 0x1bb   :  { %v169_v37 = vpop.xlane.xlu0 %168 }
 0x1bc   :  { %v170_v38 = vrot.slane %v169_v37, 4 }
 0x1be   :  { %v171_v39 = vadd.f32 %v170_v38, %v169_v37 }
 0x1c0   :  { %v172_v40 = vrot.slane %v171_v39, 2 }
 0x1c2   :  { %v173_v41 = vadd.f32 %v172_v40, %v171_v39 }
 0x1c4   :  { %v174_v42 = vrot.slane %v173_v41, 1 }
 0x1c6   :  { %v175_v43 = vadd.f32 %v174_v42, %v173_v41 }
 0x1c8   :  { %276 = vpush %v175_v43 }
 0x1f9   :  { %s277_s2 = spop %276 }
 0x1fa   :  { %178 = sst [smem:[#allocation8]] %s277_s2 }
 0x1fb   :  { %339 = shalt.err (!%p336_p4)
}
 0x1fc   :  { %s353_s18 = smov [#allocation8]  }
 0x1fd   :  { %186 = dma.smem_to_hbm %s353_s18, 16, %s416_s3, [#allocation5]  }
 0x1fe   :  { %344 = dma.done.wait [#allocation5], 16  }
 0x1ff   :  { %345 = vsyncadd [#allocation5], 4294967280 }
 0x200   :  { %190 = sfence }
 0x201   :  { %191 = vsyncpa [#allocation4], 1 }
 0x202   :  { %192 = vsyncpa [#allocation7], 1 }
 0x203   :  { %193 = vsyncpa [#allocation5], 1 }

</bundles_post_ra>
